<compile_context>
chip_gen: v6e
topology: v6e:2x2x1
jax: 0.10.0
libtpu: 0.0.40
codegen_flags: <defaults>
</compile_context>

<pallas_src>
import jax
import jax.numpy as jnp
from jax import lax
from jax.experimental import pallas as pl
from jax.experimental.pallas import tpu as pltpu

LEAKY_SLOPE = 0.01  # torch.nn.functional.leaky_relu default


def upconv_kernel(x_ref, w_ref, b_ref, o_ref, xpad_ref):
    # x_ref:    (1, H, W*Cin)           bf16 input rows, channels folded into lanes
    # w_ref:    (KH, W*Cin, Wo*Cout)    bf16 banded conv weights (no W-upsample bake)
    # b_ref:    (1, Wo*Cout)            f32 bias tiled to the output column layout
    # o_ref:    (1, 2, 2, Ho, Wo*Cout)  f32 (r_h, r_w)-duplicated, lane-dense output
    # xpad_ref: (H + 2*pad, W*Cin)      bf16 VMEM scratch with zero H-halo
    H = x_ref.shape[1]
    WC = x_ref.shape[2]
    KH = w_ref.shape[0]
    Ho = o_ref.shape[3]
    NO = o_ref.shape[4]
    Hp = xpad_ref.shape[0]
    pad = (Hp - H) // 2

    # Zero only the halo rows (every step -> safe under megacore), copy interior.
    if pad > 0:
        zeros = jnp.zeros((pad, WC), xpad_ref.dtype)
        xpad_ref[pl.ds(0, pad), :] = zeros
        xpad_ref[pl.ds(pad + H, pad), :] = zeros
    xpad_ref[pl.ds(pad, H), :] = x_ref[0, :, :]

    # Accumulator starts at the broadcast bias (saves a separate VPU bias pass).
    acc = jnp.broadcast_to(b_ref[...], (Ho, NO)).astype(jnp.float32)

    # KH dense bf16 matmuls (sublane-only slices, no relayouts), f32 accumulation.
    for kh in range(KH):  # static unroll, KH = 3
        acc = acc + jnp.dot(xpad_ref[pl.ds(kh, Ho), :], w_ref[kh],
                            preferred_element_type=jnp.float32)

    acc = jnp.where(acc >= 0, acc, LEAKY_SLOPE * acc)   # leaky_relu (f32 VPU)
    y = acc.astype(o_ref.dtype)

    # x2 nearest upsample = four whole-tile, lane-dense stores; the (h, r_h) and
    # (w, r_w) interleaves are fused into the wrapper's NCHW transpose.
    o_ref[0, 0, 0, :, :] = y
    o_ref[0, 0, 1, :, :] = y
    o_ref[0, 1, 0, :, :] = y
    o_ref[0, 1, 1, :, :] = y


def _build_band_weights(weight_hwio, W, padding):
    """Banded weight matrix: (KH, W*Cin, Wo*Cout), bf16.

    entry[kh, u*Cin + ci, wo*Cout + co] = weight[kh, u - wo + padding, ci, co]
    when 0 <= u - wo + padding < KW, else 0.  The dropped (out-of-range) rows are
    exactly the zero-padding pixels of the conv along W.  No x2 W-duplication is
    baked in (that is handled by the four output slabs + wrapper transpose).
    """
    KH, KW, Cin, Cout = weight_hwio.shape
    Wo = W + 2 * padding - KW + 1
    WC = W * Cin

    j = jnp.arange(WC)
    u = j // Cin                       # input pixel index
    ci = j % Cin                       # input channel
    wo = jnp.arange(Wo)                # output pixel index
    kw = u[:, None] - wo[None, :] + padding          # (WC, Wo)
    valid = (kw >= 0) & (kw < KW)
    kw_c = jnp.clip(kw, 0, KW - 1)

    band = weight_hwio[:, kw_c, ci[:, None], :]      # (KH, WC, Wo, Cout)
    band = band * valid[None, :, :, None].astype(band.dtype)
    return band.reshape(KH, WC, Wo * Cout).astype(jnp.bfloat16)


def up_conv_block(x_nchw, weight_hwio, bias, padding=1):
    """x_nchw: (B, Cin, H, W) f32. Returns (B, Cout, 2*Ho, 2*Wo) f32.
    Matches: Conv2d(pad=padding, k=3, stride=1) -> leaky_relu -> Upsample(x2, nearest).
    """
    B, Cin, H, W = x_nchw.shape
    KH, KW, _, Cout = weight_hwio.shape
    Ho = H + 2 * padding - KH + 1
    Wo = W + 2 * padding - KW + 1
    WC = W * Cin
    NO = Wo * Cout
    Hp = H + 2 * padding

    # NCHW -> rows with channels folded into lanes: (B, H, W*Cin), bf16 for the MXU.
    # TODO(synk): keep the surrounding model channels-last to avoid this HBM pass.
    x_rows = (jnp.transpose(x_nchw, (0, 2, 3, 1))
              .reshape(B, H, WC).astype(jnp.bfloat16))
    wmat = _build_band_weights(weight_hwio, W, padding)          # (KH, WC, NO) bf16
    brow = jnp.tile(bias, Wo).reshape(1, NO).astype(jnp.float32)

    out = pl.pallas_call(
        upconv_kernel,
        out_shape=jax.ShapeDtypeStruct((B, 2, 2, Ho, NO), jnp.float32),
        grid_spec=pltpu.PrefetchScalarGridSpec(
            num_scalar_prefetch=0,
            grid=(B,),
            in_specs=[
                pl.BlockSpec((1, H, WC), lambda b: (b, 0, 0)),
                # Constant index_map -> weight tile DMA'd once, not per grid step.
                pl.BlockSpec((KH, WC, NO), lambda b: (0, 0, 0)),
                pl.BlockSpec((1, NO), lambda b: (0, 0)),
            ],
            out_specs=pl.BlockSpec((1, 2, 2, Ho, NO),
                                   lambda b: (b, 0, 0, 0, 0)),
            scratch_shapes=[pltpu.VMEM((Hp, WC), jnp.bfloat16)],
        ),
        compiler_params=pltpu.CompilerParams(
            dimension_semantics=("parallel",),
            vmem_limit_bytes=32 * 1024 * 1024),
    )(x_rows, wmat, brow)

    # (B, 2, 2, Ho, Wo*Cout) -> (B, Cout, 2Ho, 2Wo): both upsample interleaves are
    # fused into the single channels-last -> NCHW transpose.
    out = out.reshape(B, 2, 2, Ho, Wo, Cout)
    out = jnp.transpose(out, (0, 5, 3, 1, 4, 2))     # (B, Cout, Ho, r_h, Wo, r_w)
    return out.reshape(B, Cout, 2 * Ho, 2 * Wo)


def reference(x_nchw, weight_hwio, bias, padding=1):
    x_nhwc = jnp.transpose(x_nchw, (0, 2, 3, 1))
    y = lax.conv_general_dilated(
        x_nhwc, weight_hwio, window_strides=(1, 1),
        padding=((padding, padding), (padding, padding)),
        dimension_numbers=("NHWC", "HWIO", "NHWC"))
    y = y + bias[None, None, None, :]
    y = jnp.where(y >= 0, y, LEAKY_SLOPE * y)
    y = jnp.repeat(jnp.repeat(y, 2, axis=1), 2, axis=2)
    return jnp.transpose(y, (0, 3, 1, 2))


if __name__ == "__main__":
    key = jax.random.PRNGKey(0)
    B, Cin, Cout, H, W = 2, 4, 8, 16, 16
    KH = KW = 3

    kx, kw_, kb = jax.random.split(key, 3)
    x = jax.random.normal(kx, (B, Cin, H, W), dtype=jnp.float32)
    # deterministic "PyTorch-like" init scale
    fan_in = Cin * KH * KW
    bound = 1.0 / (fan_in ** 0.5)
    weight = jax.random.uniform(kw_, (KH, KW, Cin, Cout),
                                minval=-bound, maxval=bound, dtype=jnp.float32)
    bias = jax.random.uniform(kb, (Cout,), minval=-bound, maxval=bound,
                              dtype=jnp.float32)

    out = up_conv_block(x, weight, bias)
    out = jax.block_until_ready(out)

    ref = jax.block_until_ready(reference(x, weight, bias))
    assert out.shape == (B, Cout, 2 * H, 2 * W), out.shape
    # bf16 inputs/weights with f32 accumulation -> slightly looser tolerance.
    assert jnp.allclose(out, ref, atol=2e-2, rtol=2e-2), "mismatch vs reference"

    print("KERNEL_OK")
</pallas_src>

<mosaic_0001>
module attributes {stable_mosaic.version = 11 : i64} {
  func.func @upconv_kernel(%arg0: i32, %arg1: memref<1x16x64xbf16, #tpu.memory_space<vmem>>, %arg2: memref<3x64x128xbf16, #tpu.memory_space<vmem>>, %arg3: memref<1x128xf32, #tpu.memory_space<vmem>>, %arg4: memref<1x2x2x16x128xf32, #tpu.memory_space<vmem>>, %arg5: memref<18x64xbf16, #tpu.memory_space<vmem>>) attributes {dimension_semantics = [#tpu.dimension_semantics<parallel>], iteration_bounds = array<i64: 2>, scalar_prefetch = 0 : i64, scratch_operands = 1 : i64, tpu.core_type = #tpu.core_type<tc>, window_params = [{transform_indices = @transform_0, window_bounds = array<i64: 1, 16, 64>}, {pipeline_mode = #tpu.pipeline_mode<synchronous>, transform_indices = @transform_1, window_bounds = array<i64: 3, 64, 128>}, {pipeline_mode = #tpu.pipeline_mode<synchronous>, transform_indices = @transform_2, window_bounds = array<i64: 1, 128>}, {transform_indices = @transform_3, window_bounds = array<i64: 1, 2, 2, 16, 128>}]} {
    %cst = arith.constant 0.000000e+00 : bf16
    %0 = vector.broadcast %cst : bf16 to vector<1x64xbf16>
    %c0 = arith.constant 0 : index
    %c0_0 = arith.constant 0 : index
    %1 = vector.load %arg5[%c0, %c0_0] : memref<18x64xbf16, #tpu.memory_space<vmem>>, vector<1x64xbf16>
    tpu.vector_store %arg5[%c0, %c0_0], %0 {strides = array<i32>} : memref<18x64xbf16, #tpu.memory_space<vmem>>, vector<1x64xbf16>,
    %c17 = arith.constant 17 : index
    %c0_1 = arith.constant 0 : index
    %2 = vector.load %arg5[%c17, %c0_1] : memref<18x64xbf16, #tpu.memory_space<vmem>>, vector<1x64xbf16>
    tpu.vector_store %arg5[%c17, %c0_1], %0 {strides = array<i32>} : memref<18x64xbf16, #tpu.memory_space<vmem>>, vector<1x64xbf16>,
    %c0_2 = arith.constant 0 : index
    %c0_3 = arith.constant 0 : index
    %c0_4 = arith.constant 0 : index
    %3 = vector.load %arg1[%c0_2, %c0_3, %c0_4] : memref<1x16x64xbf16, #tpu.memory_space<vmem>>, vector<1x16x64xbf16>
    %4 = vector.shape_cast %3 : vector<1x16x64xbf16> to vector<16x64xbf16>
    %c1 = arith.constant 1 : index
    %c0_5 = arith.constant 0 : index
    %5 = vector.load %arg5[%c1, %c0_5] : memref<18x64xbf16, #tpu.memory_space<vmem>>, vector<16x64xbf16>
    tpu.vector_store %arg5[%c1, %c0_5], %4 {strides = array<i32>} : memref<18x64xbf16, #tpu.memory_space<vmem>>, vector<16x64xbf16>,
    %c0_6 = arith.constant 0 : index
    %c0_7 = arith.constant 0 : index
    %6 = vector.load %arg3[%c0_6, %c0_7] : memref<1x128xf32, #tpu.memory_space<vmem>>, vector<1x128xf32>
    %7 = vector.shape_cast %6 : vector<1x128xf32> to vector<1x128xf32>
    %8 = vector.broadcast %7 : vector<1x128xf32> to vector<16x128xf32>
    %c0_8 = arith.constant 0 : index
    %c0_9 = arith.constant 0 : index
    %9 = vector.load %arg5[%c0_8, %c0_9] : memref<18x64xbf16, #tpu.memory_space<vmem>>, vector<16x64xbf16>
    %c0_10 = arith.constant 0 : index
    %c0_11 = arith.constant 0 : index
    %c0_12 = arith.constant 0 : index
    %10 = vector.load %arg2[%c0_10, %c0_11, %c0_12] : memref<3x64x128xbf16, #tpu.memory_space<vmem>>, vector<1x64x128xbf16>
    %11 = vector.shape_cast %10 : vector<1x64x128xbf16> to vector<64x128xbf16>
    %cst_13 = arith.constant dense<0.000000e+00> : vector<16x128xf32>
    %12 = tpu.matmul %9, %11, %cst_13 {dimension_numbers = #tpu.dot_dimension_numbers<[1], [0], [0], [1], [0, 0, 1, 1], [], []>} : vector<16x64xbf16>, vector<64x128xbf16>, vector<16x128xf32> -> vector<16x128xf32>
    %13 = arith.addf %8, %12 : vector<16x128xf32>
    %c1_14 = arith.constant 1 : index
    %c0_15 = arith.constant 0 : index
    %14 = vector.load %arg5[%c1_14, %c0_15] : memref<18x64xbf16, #tpu.memory_space<vmem>>, vector<16x64xbf16>
    %c1_16 = arith.constant 1 : index
    %c0_17 = arith.constant 0 : index
    %c0_18 = arith.constant 0 : index
    %15 = vector.load %arg2[%c1_16, %c0_17, %c0_18] : memref<3x64x128xbf16, #tpu.memory_space<vmem>>, vector<1x64x128xbf16>
    %16 = vector.shape_cast %15 : vector<1x64x128xbf16> to vector<64x128xbf16>
    %cst_19 = arith.constant dense<0.000000e+00> : vector<16x128xf32>
    %17 = tpu.matmul %14, %16, %cst_19 {dimension_numbers = #tpu.dot_dimension_numbers<[1], [0], [0], [1], [0, 0, 1, 1], [], []>} : vector<16x64xbf16>, vector<64x128xbf16>, vector<16x128xf32> -> vector<16x128xf32>
    %18 = arith.addf %13, %17 : vector<16x128xf32>
    %c2 = arith.constant 2 : index
    %c0_20 = arith.constant 0 : index
    %19 = vector.load %arg5[%c2, %c0_20] : memref<18x64xbf16, #tpu.memory_space<vmem>>, vector<16x64xbf16>
    %c2_21 = arith.constant 2 : index
    %c0_22 = arith.constant 0 : index
    %c0_23 = arith.constant 0 : index
    %20 = vector.load %arg2[%c2_21, %c0_22, %c0_23] : memref<3x64x128xbf16, #tpu.memory_space<vmem>>, vector<1x64x128xbf16>
    %21 = vector.shape_cast %20 : vector<1x64x128xbf16> to vector<64x128xbf16>
    %cst_24 = arith.constant dense<0.000000e+00> : vector<16x128xf32>
    %22 = tpu.matmul %19, %21, %cst_24 {dimension_numbers = #tpu.dot_dimension_numbers<[1], [0], [0], [1], [0, 0, 1, 1], [], []>} : vector<16x64xbf16>, vector<64x128xbf16>, vector<16x128xf32> -> vector<16x128xf32>
    %23 = arith.addf %18, %22 : vector<16x128xf32>
    %cst_25 = arith.constant 0.000000e+00 : f32
    %24 = vector.broadcast %cst_25 : f32 to vector<16x128xf32>
    %25 = arith.cmpf oge, %23, %24 : vector<16x128xf32>
    %cst_26 = arith.constant 0.00999999977 : f32
    %26 = vector.broadcast %cst_26 : f32 to vector<16x128xf32>
    %27 = arith.mulf %26, %23 : vector<16x128xf32>
    %28 = arith.select %25, %23, %27 : vector<16x128xi1>, vector<16x128xf32>
    %c0_27 = arith.constant 0 : index
    %c0_28 = arith.constant 0 : index
    %c0_29 = arith.constant 0 : index
    %c0_30 = arith.constant 0 : index
    %c0_31 = arith.constant 0 : index
    %29 = vector.load %arg4[%c0_27, %c0_28, %c0_29, %c0_30, %c0_31] : memref<1x2x2x16x128xf32, #tpu.memory_space<vmem>>, vector<1x1x1x16x128xf32>
    %30 = vector.shape_cast %29 : vector<1x1x1x16x128xf32> to vector<16x128xf32>
    %31 = vector.shape_cast %28 : vector<16x128xf32> to vector<1x1x1x16x128xf32>
    tpu.vector_store %arg4[%c0_27, %c0_28, %c0_29, %c0_30, %c0_31], %31 {strides = array<i32>} : memref<1x2x2x16x128xf32, #tpu.memory_space<vmem>>, vector<1x1x1x16x128xf32>,
    %c0_32 = arith.constant 0 : index
    %c0_33 = arith.constant 0 : index
    %c1_34 = arith.constant 1 : index
    %c0_35 = arith.constant 0 : index
    %c0_36 = arith.constant 0 : index
    %32 = vector.load %arg4[%c0_32, %c0_33, %c1_34, %c0_35, %c0_36] : memref<1x2x2x16x128xf32, #tpu.memory_space<vmem>>, vector<1x1x1x16x128xf32>
    %33 = vector.shape_cast %32 : vector<1x1x1x16x128xf32> to vector<16x128xf32>
    %34 = vector.shape_cast %28 : vector<16x128xf32> to vector<1x1x1x16x128xf32>
    tpu.vector_store %arg4[%c0_32, %c0_33, %c1_34, %c0_35, %c0_36], %34 {strides = array<i32>} : memref<1x2x2x16x128xf32, #tpu.memory_space<vmem>>, vector<1x1x1x16x128xf32>,
    %c0_37 = arith.constant 0 : index
    %c1_38 = arith.constant 1 : index
    %c0_39 = arith.constant 0 : index
    %c0_40 = arith.constant 0 : index
    %c0_41 = arith.constant 0 : index
    %35 = vector.load %arg4[%c0_37, %c1_38, %c0_39, %c0_40, %c0_41] : memref<1x2x2x16x128xf32, #tpu.memory_space<vmem>>, vector<1x1x1x16x128xf32>
    %36 = vector.shape_cast %35 : vector<1x1x1x16x128xf32> to vector<16x128xf32>
    %37 = vector.shape_cast %28 : vector<16x128xf32> to vector<1x1x1x16x128xf32>
    tpu.vector_store %arg4[%c0_37, %c1_38, %c0_39, %c0_40, %c0_41], %37 {strides = array<i32>} : memref<1x2x2x16x128xf32, #tpu.memory_space<vmem>>, vector<1x1x1x16x128xf32>,
    %c0_42 = arith.constant 0 : index
    %c1_43 = arith.constant 1 : index
    %c1_44 = arith.constant 1 : index
    %c0_45 = arith.constant 0 : index
    %c0_46 = arith.constant 0 : index
    %38 = vector.load %arg4[%c0_42, %c1_43, %c1_44, %c0_45, %c0_46] : memref<1x2x2x16x128xf32, #tpu.memory_space<vmem>>, vector<1x1x1x16x128xf32>
    %39 = vector.shape_cast %38 : vector<1x1x1x16x128xf32> to vector<16x128xf32>
    %40 = vector.shape_cast %28 : vector<16x128xf32> to vector<1x1x1x16x128xf32>
    tpu.vector_store %arg4[%c0_42, %c1_43, %c1_44, %c0_45, %c0_46], %40 {strides = array<i32>} : memref<1x2x2x16x128xf32, #tpu.memory_space<vmem>>, vector<1x1x1x16x128xf32>,
    return
  }
  func.func @transform_0(%arg0: i32) -> (i32, i32, i32) {
    %c0_i32 = arith.constant 0 : i32
    %c0_i32_0 = arith.constant 0 : i32
    %c0_i32_1 = arith.constant 0 : i32
    return %arg0, %c0_i32, %c0_i32_0 : i32, i32, i32
  }
  func.func @transform_1(%arg0: i32) -> (i32, i32, i32) {
    %c0_i32 = arith.constant 0 : i32
    %c0_i32_0 = arith.constant 0 : i32
    %c0_i32_1 = arith.constant 0 : i32
    %c0_i32_2 = arith.constant 0 : i32
    return %c0_i32, %c0_i32_0, %c0_i32_1 : i32, i32, i32
  }
  func.func @transform_2(%arg0: i32) -> (i32, i32) {
    %c0_i32 = arith.constant 0 : i32
    %c0_i32_0 = arith.constant 0 : i32
    %c0_i32_1 = arith.constant 0 : i32
    return %c0_i32, %c0_i32_0 : i32, i32
  }
  func.func @transform_3(%arg0: i32) -> (i32, i32, i32, i32, i32) {
    %c0_i32 = arith.constant 0 : i32
    %c0_i32_0 = arith.constant 0 : i32
    %c0_i32_1 = arith.constant 0 : i32
    %c0_i32_2 = arith.constant 0 : i32
    %c0_i32_3 = arith.constant 0 : i32
    return %arg0, %c0_i32, %c0_i32_0, %c0_i32_1, %c0_i32_2 : i32, i32, i32, i32, i32
  }
}

</mosaic_0001>

<bundles_post_ra>
// kernel: tpu_custom_call.1
= control target key start
LH: loop header
LB: loop body
LE: loop exit
PB: predicated region body
PF: predicated region fallthrough
CT: control target
= control target key end

     0   :  { %8 = vsyncpa [#allocation4], 0  ;;  %s1207_s0 = inlined_call_operand.hbm [shape: bf16[2,16,64], index: 0, kind: input, shape index: {}]   ;;  %s1208_s1 = inlined_call_operand.hbm [shape: bf16[3,64,128], index: 1, kind: input, shape index: {}]   ;;  %s1209_s2 = inlined_call_operand.vmem [shape: f32[1,128], index: 2, kind: input, shape index: {}]   ;;  %s1210_s3 = inlined_call_operand.hbm [shape: f32[2,2,2,16,128], index: 3, kind: output, shape index: {}]  }
   0x1   :  { %10 = vsyncpa [#allocation4 + $0x1], 0 }
   0x2   :  { %11 = vsyncpa [#allocation7], 0 }
   0x3   :  { %12 = vsyncpa [#allocation5], 0 }
   0x4   :  { %14 = vsyncpa [#allocation5 + $0x1], 0  ;;  %s974_s12 = smov 0   ;;  %s976_s13 = smov 0  }
   0x5   :  { %s978_s14 = smov 0   ;;  %s980_s15 = smov 0  }
   0x6 LB: > { %s995_s16 = sadd.s32 4294967295, %s943_s15   ;;  %s647_s17 = sadd.s32 4294967294, %s943_s15   ;;  %s943_s15 = sphi %s980_s15, %s1236_s15   ;;  %s939_s14 = sphi %s978_s14, %s1235_s14   ;;  %s935_s13 = sphi %s976_s13, %s1234_s13   ;;  %s931_s12 = sphi %s974_s12, %s1233_s12  }
   0x7   : > { %p40_p0 = scmp.ne.s32.totalorder %s935_s13, %s931_s12  ;;  %p1211_p1 = scmp.eq.s32.totalorder %s995_s16, 0 }
   0x8   : > { %p112_p3 = scmp.eq.s32.totalorder %s647_s17, 1  ;;  %p648_p5 = scmp.ge.s32.totalorder %s943_s15, 1 }
   0x9   : > { %p1004_p4 = por %p1211_p1, %p40_p0  ;;  %p119_p7 = scmp.lt.s32.totalorder %s943_s15, 3 }
   0xa   : > { %p1009_p6 = por %p112_p3, %p40_p0  ;;  %s945_s21 = smov [#allocation6]  }
   0xb   : > { %s1215_s18 = scalar_select %p1004_p4, 1, 0 }
   0xc   : > { %s1216_s19 = scalar_select %p1009_p6, 1, 0 }
   0xd   : > { %p1014_p8 = pnand %p648_p5, %p119_p7  ;;  %s131_s22 = sshll.u32 %s945_s21, 4  ;;  %s132_s22 = int_to_ptr.vmem [resolvable:$true] %s131_s22 }
   0xe   : > { %s1028_s24 = sadd.s32 1, %s943_s15   ;;  %s27_s25 = sadd.s32 1, %s939_s14 }
   0xf   : > { %s1217_s20 = scalar_select %p1014_p8, 1, 0 }
  0x10   : > { %p750_p9 = pneg %p1014_p8  ;;  %s24_s26 = ssub.s32 %s943_s15, %s1028_s24 }
  0x11   : > { %s832_s27 = scalar_lea.vmem %s132_s22, 1536  ;;  %p840_p5 = scmp.lt.s32.totalorder %s132_s22, %s132_s22 }
  0x12   : > { %p1023_p11 = pnand %p750_p9, %p1211_p1  ;;  %p833_p13 = scmp.ne.s32.totalorder %s132_s22, %s832_s27 }
  0x13   : > { %p841_p7 = scmp.lt.s32.totalorder %s832_s27, %s832_s27 }
  0x14   : > { %p823_p12 = pneg %p1023_p11 }
  0x15   : > { %p842_p10 = por %p841_p7, %p840_p5 }
  0x16   : > { %p835_p0 = pnand %p833_p13, %p823_p12 }
  0x18   : > { %p836_p3 = pneg %p835_p0 }
  0x1a   : > { %p843_p2 = pnand %p842_p10, %p836_p3 }
  0x1c   : > { %846 = shalt.err (!%p843_p2)
}
  0x1d   : > { %s946_s28 = smov 64   ;;  %s947_s29 = smov 4  }
  0x1e   : > { %753 = dma.hbm_to_vmem [thread:$0]  (!%p1023_p11), %s1208_s1, 1536, %s132_s22, [#allocation7], %s946_s28, %s946_s28, %s947_s29  }
  0x1f   : > { %p25_p2 = scmp.eq.s32.totalorder %s24_s26, 0  ;;  %p34_p9 = scmp.ne.s32.totalorder %s939_s14, %s935_s13 }
  0x20   : > { %p35_p10 = scmp.eq.s32.totalorder %s943_s15, 0  ;;  %p763_p12 = scmp.lt.s32.totalorder %s943_s15, 2 }
  0x21   : > { %s1048_s5 = scalar_select %p25_p2, %s939_s14, %s27_s25  }
  0x22   : > { %p36_p13 = por %p35_p10, %p34_p9  ;;  %p1219_p0 = scmp.eq.s32.totalorder %s995_s16, 1 }
  0x23   : > { %s148_s7 = sand.u32 1, %s939_s14   ;;  %s689_s8 = sshll.u32 %s943_s15, 7 }
  0x24   : > { %p1052_p3 = por %p1219_p0, %p34_p9  ;;  %s651_s9 = sshll.u32 %s148_s7, 3 }
  0x25   : > { %s1061_s17 = scalar_lea.hbm %s1207_s0, %s689_s8  ;;  %s152_s21 = scalar_lea.vmem [#allocation3], %s651_s9 }
  0x26   : > { %s1220_s6 = scalar_select %p1052_p3, 1, 0 }
  0x27   : > { %s159_s22 = sshll.u32 %s152_s21, 4  ;;  %p1063_p11 = pnand %p763_p12, %p36_p13  ;;  %s1067_s22 = int_to_ptr.vmem [resolvable:$true] %s159_s22 }
  0x28   : > { %s1069_s25 = scalar_lea.sflag [#allocation4], %s148_s7  ;;  %s847_s26 = scalar_lea.hbm %s1061_s17, 128 }
  0x29   : > { %p848_p5 = scmp.ne.s32.totalorder %s1061_s17, %s847_s26  ;;  %p849_p7 = pneg %p1063_p11 }
  0x2a   : > { %s852_s4 = scalar_lea.hbm %s1207_s0, 256  ;;  %p853_p10 = scmp.lt.s32.totalorder %s1061_s17, %s1207_s0 }
  0x2b   : > { %p850_p2 = pnand %p849_p7, %p848_p5  ;;  %p854_p12 = scmp.lt.s32.totalorder %s852_s4, %s847_s26 }
  0x2d   : > { %p851_p9 = pneg %p850_p2  ;;  %p855_p13 = por %p854_p12, %p853_p10 }
  0x2f   : > { %p856_p0 = pnand %p855_p13, %p851_p9 }
  0x31   : > { %859 = shalt.err (!%p856_p0)
}
  0x32   : > { %s860_s7 = scalar_lea.vmem %s1067_s22, 128  ;;  %s948_s10 = smov [#allocation3]  }
  0x33   : > { %p861_p1 = scmp.ne.s32.totalorder %s1067_s22, %s860_s7  ;;  %s865_s11 = sshll.u32 %s948_s10, 4  ;;  %s866_s11 = int_to_ptr.vmem [resolvable:$false] %s865_s11 }
  0x34   : > { %s867_s21 = scalar_lea.vmem %s866_s11, 256  ;;  %p868_p2 = scmp.lt.s32.totalorder %s1067_s22, %s866_s11 }
  0x35   : > { %p863_p6 = pnand %p861_p1, %p849_p7  ;;  %p869_p3 = scmp.lt.s32.totalorder %s867_s21, %s860_s7 }
  0x37   : > { %p864_p5 = pneg %p863_p6  ;;  %p870_p4 = por %p869_p3, %p868_p2 }
  0x39   : > { %p871_p8 = pnand %p870_p4, %p864_p5 }
  0x3b   : > { %874 = shalt.err (!%p871_p8)
}
  0x3c   : > { %757 = dma.hbm_to_vmem [thread:$0]  (!%p1063_p11), %s1061_s17, 128, %s1067_s22, %s1069_s25, %s946_s28, %s946_s28, %s947_s29  }
  0x3d   : > { %p1222_p1 = scmp.ne.s32.totalorder %s1217_s20, 0 }
  0x3e   : > { %s1096_s26 = sand.u32 (!%p1222_p1), 1, %s935_s13   ;;  %p1223_p4 = scmp.ne.s32.totalorder (!%p1222_p1), %s1215_s18, 0 }
  0x3f   : > { %171 = sbr.rel (%p1222_p1) target bundleno = 328 (0x148), region = 32  ;;  %s655_s27 = sshll.u32 (!%p1222_p1), %s1096_s26, 3 }
  0x40   : > { %s174_s30 = scalar_lea.sflag (!%p1222_p1), [#allocation4], %s1096_s26  ;;  %s1100_s4 = scalar_lea.vmem (!%p1222_p1), [#allocation3], %s655_s27 }
  0x44   : > { %918 = dma.done.wait (%p1223_p4), %s174_s30, 128  }
  0x45   : > { %920 = vsyncadd (%p1223_p4), %s174_s30, 4294967168  ;;  %p1224_p6 = scmp.eq.s32.totalorder %s995_s16, 0 }
  0x47   : > { %922 = dma.done.wait (%p1224_p6), [#allocation7], 1536   ;;  %p1225_p8 = pmov %p1224_p6 }
  0x48   : > { %v949_v0 = vmov 0.0   ;;  %vm950_vm0 = vmmov 0   ;;  %vm205_vm1 = vcmask 516096   ;;  %vm206_vm2 = vsmask.f32 256  ;;  %v805_v2 = vld [vmem:[#allocation6 + $0x18] sm:$0xff]  }
  0x49   : > { %924 = vsyncadd (%p1225_p8), [#allocation7], 4294965760  ;;  %706 = vmatprep.subr.bf16.mxu0 %v949_v0  ;;  %718 = vmatprep.subr.bf16.mxu1 %v949_v0  ;;  %vm211_vm3 = vsmask.f32 7938  ;;  %vm218_vm6 = vsmask.f32 4368 }
  0x4a   : > { %714 = vmatprep.mubr.msk.bf16.mxu0 %vm950_vm0, %v949_v0  ;;  %726 = vmatprep.mubr.msk.bf16.mxu1 %vm950_vm0, %v949_v0  ;;  %vm1117_vm4 = vmand %vm205_vm1, %vm206_vm2  ;;  %v806_v4 = vld [vmem:[#allocation6 + $0x10] sm:$0xff]   ;;  %v808_v5 = vld [vmem:[#allocation6 + $0x38] sm:$0xff]   ;;  %vm240_vm7 = vcmask 519168   ;;  %vm296_vm10 = vcmask 523264   ;;  %vm363_vm11 = vsmask.f32 7424 }
  0x4b   : > { %vm1122_vm5 = vmand %vm205_vm1, %vm211_vm3  ;;  %707 = vmatpush3.bf16.msra.mxu0 %v805_v2  ;;  %v807_v6 = vld [vmem:[#allocation6 + $0x8] sm:$0xff]   ;;  %719 = vmatpush3.bf16.msra.mxu1 %v808_v5  ;;  %v810_v7 = vld [vmem:[#allocation6 + $0x30] sm:$0xff]   ;;  %vm459_vm12 = vcmask 1046528   ;;  %s657_s28 = sshll.u32 %s1096_s26, 6  ;;  %s690_s29 = sshll.u32 %s995_s16, 10 }
  0x4c   : > { %708 = vmatprep.subr.bf16.mxu0 %v949_v0  ;;  %720 = vmatprep.subr.bf16.mxu1 %v949_v0  ;;  %v208_v8 = vld [vmem:[#allocation2] sm:$0x1]  ;;  %v213_v9 = vld [vmem:[#allocation2 + $0x8] sm:$0x1]  ;;  %v216_v10 = vld [vmem:[%s1100_s4] sm:$0xf]  ;;  %s1162_s8 = scalar_lea.hbm %s1210_s3, %s690_s29 }
  0x4d   : > { %v209_v11 = vsel %vm1117_vm4, 0, %v208_v8  ;;  %v214_v12 = vsel %vm1122_vm5, 0, %v213_v9  ;;  %v217_v13 = vld [vmem:[%s1100_s4 + $0x4] sm:$0xf]  ;;  %v221_v14 = vshrl.u32 %v216_v10, 16  ;;  %v224_v15 = vshll.u32 %v216_v10, 16  ;;  %vm219_vm8 = vmor %vm206_vm2, %vm218_vm6 }
  0x4e   : > { %210 = vst [vmem:[#allocation2] sm:$0x1] %v209_v11  ;;  %v229_v16 = vshrl.u32 %v217_v13, 16  ;;  %v232_v17 = vshll.u32 %v217_v13, 16  ;;  %215 = vst [vmem:[#allocation2 + $0x8] sm:$0x1] %v214_v12 }
  0x4f   : > { %709 = vmatpush3.bf16.msra.mxu0 %v806_v4  ;;  %721 = vmatpush3.bf16.msra.mxu1 %v810_v7  ;;  %v223_v18 = vrot.slane %v221_v14, 7  ;;  %v812_v19 = vld [vmem:[#allocation6 + $0x28] sm:$0xff]   ;;  %v809_v20 = vld [vmem:[#allocation6] sm:$0xff]   ;;  %vm241_vm9 = vmand %vm240_vm7, %vm211_vm3  ;;  %s203_s17 = scalar_lea.vmem [#allocation8], %s657_s28  ;;  %s551_s16 = scalar_lea.sflag [#allocation5], %s1096_s26 }
  0x50   : > { %710 = vmatprep.subr.bf16.mxu0 %v949_v0  ;;  %722 = vmatprep.subr.bf16.mxu1 %v949_v0  ;;  %v231_v21 = vrot.slane %v229_v16, 7  ;;  %v814_v26 = vld [vmem:[#allocation6 + $0x20] sm:$0xff]   ;;  %v813_v33 = vld [vmem:[#allocation6 + $0x58] sm:$0xff]   ;;  %v815_v38 = vld [vmem:[#allocation6 + $0x50] sm:$0xff]   ;;  %s564_s22 = sshll.u32 %s203_s17, 4  ;;  %p1230_p11 = scmp.ne.s32.totalorder %s1220_s6, 0  ;;  %s1164_s22 = int_to_ptr.vmem [resolvable:$true] %s564_s22 }
  0x51   : > { %v227_v22 = vrot.slane %v223_v18, 4  ;;  %v226_v23 = vor.u32 %v224_v15, %v223_v18  ;;  %v818_v46 = vld [vmem:[#allocation6 + $0x48] sm:$0xff]   ;;  %v819_v49 = vld [vmem:[#allocation6 + $0x40] sm:$0xff]   ;;  %s875_s9 = scalar_lea.vmem %s1164_s22, 1024  ;;  %s951_s7 = smov [#allocation8]  }
  0x52   : > { %v234_v24 = vor.u32 %v232_v17, %v231_v21  ;;  %v236_v25 = vrot.slane %v231_v21, 4  ;;  %v658_v58 = vld [vmem:[%s1209_s2] ss:$0 sm:$0xff]  ;;  %p876_p3 = scmp.ne.s32.totalorder %s1164_s22, %s875_s9  ;;  %s879_s10 = sshll.u32 %s951_s7, 4  ;;  %s880_s10 = int_to_ptr.vmem [resolvable:$false] %s879_s10 }
  0x53   : > { %711 = vmatpush3.bf16.msra.mxu0 %v807_v6  ;;  %723 = vmatpush3.bf16.msra.mxu1 %v812_v19  ;;  %s881_s11 = scalar_lea.vmem %s880_s10, 2048  ;;  %p882_p10 = scmp.lt.s32.totalorder %s1164_s22, %s880_s10 }
  0x54   : > { %712 = vmatprep.subr.bf16.mxu0 %v949_v0  ;;  %v235_v27 = vsel %vm219_vm8, %v227_v22, %v234_v24  ;;  %724 = vmatprep.subr.bf16.mxu1 %v949_v0  ;;  %p877_p7 = pnand %p876_p3, %p1230_p11  ;;  %p883_p12 = scmp.lt.s32.totalorder %s881_s11, %s875_s9 }
  0x55   : > { %v242_v28 = vld [vmem:[#allocation2] sm:$0xf]  ;;  %246 = vst.msk [vmem:[#allocation2 + $0x4] sm:$0xf] %vm240_vm7, %v235_v27  ;;  %v247_v29 = vld [vmem:[#allocation2 + $0x8] sm:$0x1] }
  0x56   : > { %v243_v30 = vsel %vm241_vm9, %v226_v23, %v242_v28  ;;  %v248_v31 = vsel %vm1117_vm4, %v236_v25, %v247_v29  ;;  %p878_p9 = pneg %p877_p7  ;;  %p884_p13 = por %p883_p12, %p882_p10 }
  0x57   : > { %713 = vmatpush3.bf16.msra.mxu0 %v809_v20  ;;  %244 = vst [vmem:[#allocation2] sm:$0xf] %v243_v30  ;;  %725 = vmatpush3.bf16.msra.mxu1 %v814_v26  ;;  %249 = vst [vmem:[#allocation2 + $0x8] sm:$0x1] %v248_v31 }
  0x58   : > { %730 = vmatprep.subr.bf16.mxu0 %v949_v0  ;;  %p885_p0 = pnand %p884_p13, %p878_p9 }
  0x5c   : > { %v344_v32 = vld [vmem:[#allocation2 + $0x4] sm:$0xf] }
  0x5e   : > { %v811_v34 = vld [vmem:[#allocation2] sm:$0xff]   ;;  %v817_v37 = vld [vmem:[#allocation2 + $0x8] ss:$0 sps:$4 sm:$0x11]  }
  0x5f   : > { %v343_v35 = vld [vmem:[#allocation2] sm:$0xf]  ;;  %715 = vmatmul.mubr.msk.bf16.vlgmr.msra.gmra.mxu0 %vm296_vm10, %v811_v34  ;;  %v372_v41 = vshll.u32 %v817_v37, 16  ;;  %v461_v51 = vrot.slane %v817_v37, 1 }
  0x60   : > { %v665_v36 = vcombine.low %v343_v35, %v344_v32  ;;  %731 = vmatpush3.bf16.msra.mxu0 %v813_v33  ;;  %738 = vmatprep.mubr.msk.bf16.mxu0 %vm950_vm0, %v949_v0  ;;  %v446_v42 = vld [vmem:[#allocation2] sm:$0xe] }
  0x61   : > { %732 = vmatprep.subr.bf16.mxu0 %v949_v0  ;;  %v374_v44 = vrot.slane %v372_v41, 1  ;;  %v672_v47 = vcombine.low %v446_v42, %v344_v32 }
  0x62   : > { %v365_v39 = vshrl.u32 %v665_v36, 16  ;;  %v367_v40 = vshll.u32 %v665_v36, 16 }
  0x63   : > { %v460_v50 = vrot.slane %v672_v47, 1 }
  0x64   : > { %v369_v43 = vrot.slane %v367_v40, 1  ;;  %733 = vmatpush3.bf16.msra.mxu0 %v815_v38 }
  0x65   : > { %734 = vmatprep.subr.bf16.mxu0 %v949_v0  ;;  %v462_v52 = vsel %vm459_vm12, %v460_v50, %v461_v51 }
  0x66   : > { %v370_v45 = vor.u32 %v369_v43, %v365_v39 }
  0x68   : > { %v375_v48 = vsel %vm363_vm11, %v370_v45, %v374_v44  ;;  %735 = vmatpush3.bf16.msra.mxu0 %v818_v46 }
  0x69   : > { %727 = vmatmul.mubr.msk.bf16.vlgmr.msra.gmra.mxu1 %vm296_vm10, %v375_v48  ;;  %736 = vmatprep.subr.bf16.mxu0 %v949_v0 }
  0x6c   : > { %737 = vmatpush3.bf16.msra.mxu0 %v819_v49 }
  0x6f   : > { %739 = vmatmul.mubr.msk.bf16.vlgmr.msra.gmra.mxu0 %vm296_vm10, %v462_v52 }
 0x11f   : > { %v334_v53 = vpop.f32.mrf.mxu0 }
 0x120   : > { %v341_v61 = vadd.f32 %v658_v58, %v334_v53 }
 0x121   : > { %v716_v54 = vpop.f32.mrf.mxu0 }
 0x123   : > { %v337_v55 = vpop.f32.mrf.mxu0 }
 0x124   : > { %v342_v1 = vadd.f32 %v658_v58, %v337_v55 }
 0x125   : > { %v717_v56 = vpop.f32.mrf.mxu0 }
 0x129   : > { %v437_v57 = vpop.f32.mrf.mxu1 }
 0x12a   : > { %v444_v63 = vadd.f32 %v437_v57, %v341_v61 }
 0x12b   : > { %v728_v59 = vpop.f32.mrf.mxu1 }
 0x12d   : > { %v440_v60 = vpop.f32.mrf.mxu1 }
 0x12e   : > { %v445_v4 = vadd.f32 %v440_v60, %v342_v1 }
 0x12f   : > { %v729_v62 = vpop.f32.mrf.mxu1  ;;  %v524_v0 = vpop.f32.mrf.mxu0 }
 0x130   : > { %v531_v2 = vadd.f32 %v524_v0, %v444_v63 }
 0x131   : > { %v740_v3 = vpop.f32.mrf.mxu0 }
 0x132   : > { %vm533_vm13 = vcmp.ge.f32.partialorder %v531_v2, 0.0  ;;  %v535_v5 = vmul.f32 0.01, %v531_v2 }
 0x133   : > { %v527_v6 = vpop.f32.mrf.mxu0 }
 0x134   : > { %v537_v7 = vsel %vm533_vm13, %v531_v2, %v535_v5  ;;  %v532_v8 = vadd.f32 %v527_v6, %v445_v4 }
 0x135   : > { %539 = vst [vmem:[%s203_s17] sm:$0xff] %v537_v7  ;;  %678 = vst [vmem:[%s203_s17 + $0x10] sm:$0xff] %v537_v7  ;;  %v741_v9 = vpop.f32.mrf.mxu0 }
 0x136   : > { %680 = vst [vmem:[%s203_s17 + $0x20] sm:$0xff] %v537_v7  ;;  %682 = vst [vmem:[%s203_s17 + $0x30] sm:$0xff] %v537_v7  ;;  %vm534_vm14 = vcmp.ge.f32.partialorder %v532_v8, 0.0  ;;  %v536_v10 = vmul.f32 0.01, %v532_v8 }
 0x138   : > { %v538_v11 = vsel %vm534_vm14, %v532_v8, %v536_v10 }
 0x139   : > { %540 = vst [vmem:[%s203_s17 + $0x8] sm:$0xff] %v538_v11  ;;  %679 = vst [vmem:[%s203_s17 + $0x18] sm:$0xff] %v538_v11 }
 0x13a   : > { %681 = vst [vmem:[%s203_s17 + $0x28] sm:$0xff] %v538_v11  ;;  %683 = vst [vmem:[%s203_s17 + $0x38] sm:$0xff] %v538_v11 }
 0x13b   : > { %888 = shalt.err (!%p885_p0)
}
 0x13c   : > { %s889_s21 = scalar_lea.hbm %s1162_s8, 1024  ;;  %s893_s4 = scalar_lea.hbm %s1210_s3, 2048 }
 0x13d   : > { %p890_p5 = scmp.ne.s32.totalorder %s1162_s8, %s889_s21  ;;  %p894_p4 = scmp.lt.s32.totalorder %s1162_s8, %s1210_s3 }
 0x13e   : > { %p895_p6 = scmp.lt.s32.totalorder %s893_s4, %s889_s21 }
 0x13f   : > { %p891_p2 = pnand %p890_p5, %p1230_p11 }
 0x140   : > { %p896_p8 = por %p895_p6, %p894_p4 }
 0x141   : > { %p892_p1 = pneg %p891_p2 }
 0x143   : > { %p897_p3 = pnand %p896_p8, %p892_p1 }
 0x145   : > { %900 = shalt.err (!%p897_p3)
}
 0x146   : > { %s952_s28 = smov 128   ;;  %s953_s29 = smov 8  }
 0x147   : > { %748 = dma.vmem_to_hbm [thread:$0]  (%p1230_p11), %s1164_s22, 1024, %s1162_s8, %s551_s16, %s952_s28, %s952_s28, %s953_s29  }
 0x148 PF: > { %s579_s17 = sand.u32 1, %s931_s12   ;;  %p1231_p7 = scmp.ne.s32.totalorder %s1216_s19, 0 }
 0x149   : > { %p1232_p9 = scmp.ge.s32.totalorder %s943_s15, 2  ;;  %s580_s23 = scalar_lea.sflag [#allocation5], %s579_s17 }
 0x14b   : > { %p759_p10 = pnand %p1232_p9, %p1231_p7 }
 0x14d   : > { %p760_p12 = pneg %p759_p10 }
 0x14f   : > { %926 = dma.done.wait (%p760_p12), %s580_s23, 1024  }
 0x150   : > { %928 = vsyncadd (%p760_p12), %s580_s23, 4294966272  ;;  %p17_p13 = scmp.ge.s32.totalorder %s1028_s24, 4   ;;  %s1233_s12 = smov %s935_s13 }
 0x151   : > { %s1234_s13 = smov %s939_s14  ;;  %s1235_s14 = smov %s1048_s5 }
 0x152   : > { %s1236_s15 = smov %s1028_s24  ;;  %19 = sbr.rel (!%p17_p13) target bundleno = 6 (0x6), region = 86 }
 0x157   :  { %585 = vsyncpa [#allocation4], 1 }
 0x158   :  { %587 = vsyncpa [#allocation4 + $0x1], 1 }
 0x159   :  { %588 = vsyncpa [#allocation7], 1 }
 0x15a   :  { %589 = vsyncpa [#allocation5], 1 }
 0x15b   :  { %591 = vsyncpa [#allocation5 + $0x1], 1 }

</bundles_post_ra>
